<compile_context>
chip_gen: v7x
topology: tpu7x:2x2x1
jax: 0.10.0
libtpu: 0.0.40
codegen_flags: <defaults>
</compile_context>

<pallas_src>
import functools

import numpy as np
import jax
import jax.numpy as jnp
from jax.experimental import pallas as pl
from jax.experimental.pallas import tpu as pltpu


def _round_up(x, m):
    return ((x + m - 1) // m) * m


# ----------------------------- tiled matmul ---------------------------------

def _matmul_kernel(a_ref, b_ref, bias_ref, o_ref, acc_ref):
    @pl.when(pl.program_id(2) == 0)
    def _():
        acc_ref[...] = jnp.zeros_like(acc_ref)

    acc_ref[...] += jnp.dot(a_ref[...], b_ref[...],
                            preferred_element_type=jnp.float32)

    @pl.when(pl.program_id(2) == pl.num_programs(2) - 1)
    def _():
        o_ref[...] = acc_ref[...] + bias_ref[...]


def matmul(a, b, bias=None, mxu_dtype=None):
    """C = A @ B (+ bias), M/N/K tiled, f32 MXU accumulation, lane-dense out."""
    M, K = a.shape
    K2, N = b.shape
    assert K == K2
    if mxu_dtype is not None:
        a = a.astype(mxu_dtype)
        b = b.astype(mxu_dtype)
    if bias is None:
        bias = jnp.zeros((N,), jnp.float32)
    bias2d = bias.reshape(1, N).astype(jnp.float32)

    # Lane-dense, (8,128)-aligned tiles: N and K blocks are always multiples of
    # 128 (pad then slice) so stores are unmasked vst and A-tiles fill vregs;
    # tm up to 256 raises arithmetic intensity / amortizes per-step overhead.
    tn = 256 if N >= 256 else 128
    tk = min(512, _round_up(K, 128))
    tm = min(256, _round_up(M, 8))

    Mp, Np, Kp = _round_up(M, tm), _round_up(N, tn), _round_up(K, tk)
    if Mp != M or Kp != K:
        a = jnp.pad(a, ((0, Mp - M), (0, Kp - K)))
    if Kp != K or Np != N:
        b = jnp.pad(b, ((0, Kp - K), (0, Np - N)))
    if Np != N:
        bias2d = jnp.pad(bias2d, ((0, 0), (0, Np - N)))

    in_bytes = jnp.dtype(a.dtype).itemsize
    # double-buffered in/out tiles + f32 accumulator; cap under 48 MiB so the
    # same tiling is safe on v7x's 64 MiB physical VMEM.
    vmem_need = (2 * (tm * tk + tk * tn) * in_bytes
                 + 3 * tm * tn * 4 + 2 * tn * 4)
    vmem_limit = int(min(max(4 * vmem_need, 16 * 1024 * 1024),
                         48 * 1024 * 1024))

    grid = (Mp // tm, Np // tn, Kp // tk)
    out = pl.pallas_call(
        _matmul_kernel,
        out_shape=jax.ShapeDtypeStruct((Mp, Np), jnp.float32),
        grid=grid,
        in_specs=[pl.BlockSpec((tm, tk), lambda i, j, k: (i, k)),
                  pl.BlockSpec((tk, tn), lambda i, j, k: (k, j)),
                  pl.BlockSpec((1, tn), lambda i, j, k: (0, j))],
        out_specs=pl.BlockSpec((tm, tn), lambda i, j, k: (i, j)),
        scratch_shapes=[pltpu.VMEM((tm, tn), jnp.float32)],
        compiler_params=pltpu.CompilerParams(
            dimension_semantics=("parallel", "parallel", "arbitrary"),
            vmem_limit_bytes=vmem_limit),
    )(a, b, bias2d)
    if Mp != M or Np != N:
        out = out[:M, :N]
    return out


# ----------------- bilinear resize (align_corners=False) --------------------

@functools.lru_cache(maxsize=None)
def _interp_matrix(in_size, out_size):
    """F.interpolate(mode='bilinear', align_corners=False) 1-D weight matrix."""
    W = np.zeros((out_size, in_size), dtype=np.float32)
    scale = in_size / out_size
    for i in range(out_size):
        src = max((i + 0.5) * scale - 0.5, 0.0)
        x0 = int(np.floor(src))
        x1 = min(x0 + 1, in_size - 1)
        l1 = src - x0
        W[i, x0] += 1.0 - l1
        W[i, x1] += l1
    return W


@functools.lru_cache(maxsize=None)
def _upsample_kron(in_h, in_w, out_h, out_w):
    """2-D bilinear operator B with (X @ B) == Wh @ X.reshape(h,w) @ Ww^T."""
    wh = _interp_matrix(in_h, out_h)        # (out_h, in_h)
    ww = _interp_matrix(in_w, out_w)        # (out_w, in_w)
    return np.kron(wh.T, ww.T).astype(np.float32)   # (in_h*in_w, out_h*out_w)


def bilinear_resize(x, out_h, out_w):
    """x: (N, C, H, W) -> (N, C, out_h, out_w). Single lane-dense GEMM."""
    N, C, H, W = x.shape
    if (out_h, out_w) == (H, W):        # identity re-sample -> skip (exact)
        return x.astype(jnp.float32)
    b_up = jnp.asarray(_upsample_kron(H, W, out_h, out_w))   # (H*W, OH*OW)
    flat = x.reshape(N * C, H * W).astype(jnp.float32)
    out = matmul(flat, b_up)                                  # all slabs at once
    return out.reshape(N, C, out_h, out_w)


# ------------- fused mask-decoder head + 4x upsample kernel ------------------

def _decoder_head_kernel(img_ref, ped_ref, wcat_ref, bcat_ref, bup_ref,
                         masks_ref, iou_ref):
    T = masks_ref.shape[1]
    # src = image_emb + (image_pe + dense_emb): kept in VMEM, never hits HBM.
    src = img_ref[0] + ped_ref[...]                              # (HW, C)
    # one MXU pass for both heads: (2T, C) contracted with (HW, C) on C.
    proj = jax.lax.dot_general(
        wcat_ref[...], src, (((1,), (1,)), ((), ())),
        preferred_element_type=jnp.float32) + bcat_ref[...]      # (2T, HW)
    # IoU head: spatial mean pooling (lane-axis reduce on the XLU).
    iou_ref[0] = jnp.mean(proj[T:], axis=1, keepdims=True)       # (T, 1)
    # mask head + fused 4x bilinear upsample; output is 128-lane dense.
    masks_ref[0] = jnp.dot(proj[:T], bup_ref[...],
                           preferred_element_type=jnp.float32)   # (T, UH*UW)


def decoder_head_upsample(img, pe_dense, w_cat, b_cat, b_up):
    N, HW, C = img.shape
    T2 = w_cat.shape[0]
    T = T2 // 2
    UHW = b_up.shape[1]
    masks, iou = pl.pallas_call(
        _decoder_head_kernel,
        out_shape=(jax.ShapeDtypeStruct((N, T, UHW), jnp.float32),
                   jax.ShapeDtypeStruct((N, T, 1), jnp.float32)),
        grid=(N,),
        in_specs=[pl.BlockSpec((1, HW, C), lambda i: (i, 0, 0)),
                  pl.BlockSpec((HW, C), lambda i: (0, 0)),
                  pl.BlockSpec((T2, C), lambda i: (0, 0)),
                  pl.BlockSpec((T2, 1), lambda i: (0, 0)),
                  pl.BlockSpec((HW, UHW), lambda i: (0, 0))],
        out_specs=(pl.BlockSpec((1, T, UHW), lambda i: (i, 0, 0)),
                   pl.BlockSpec((1, T, 1), lambda i: (i, 0, 0))),
        compiler_params=pltpu.CompilerParams(
            dimension_semantics=("parallel",)),
    )(img.astype(jnp.float32), pe_dense.astype(jnp.float32),
      w_cat.astype(jnp.float32), b_cat.astype(jnp.float32),
      b_up.astype(jnp.float32))
    return masks, iou


# --------------------------- synthetic sub-modules ---------------------------

class ImageEncoder:
    img_size = 32
    patch = 8
    embed_dim = 32

    def __init__(self, key):
        k1, k2 = jax.random.split(key)
        fan_in = 3 * self.patch * self.patch
        self.w = jax.random.normal(k1, (fan_in, self.embed_dim), jnp.float32) * 0.02
        self.b = jax.random.normal(k2, (self.embed_dim,), jnp.float32) * 0.02

    def __call__(self, x, d_size, norm_scale=None, norm_bias=None):
        # stride==kernel conv == patchify + MXU GEMM.  Per-channel input
        # normalization is folded into (w, b): exact algebra, removes one full
        # HBM pass over the image.  GEMM runs in f32 (tiny K) for parity.
        N, C, S, _ = x.shape
        p = self.patch
        Hp = S // p
        w, b = self.w, self.b
        if norm_scale is not None:
            s_feat = jnp.repeat(norm_scale, p * p)      # matches (c,dy,dx) order
            t_feat = jnp.repeat(norm_bias, p * p)
            b = t_feat @ self.w + self.b                # tiny, constant-folded
            w = self.w * s_feat[:, None]
        # TODO(synk): patch (im2col) gather stays in XLA -- one fused relayout
        # under jit; an in-kernel gather would violate the (8,128) block rule.
        patches = x.reshape(N, C, Hp, p, Hp, p).transpose(0, 2, 4, 1, 3, 5)
        patches = patches.reshape(N * Hp * Hp, C * p * p)
        emb = matmul(patches, w, b)                     # lane-dense f32 GEMM
        # stay (N, HW, C): no NHWC->NCHW relayout before the decoder head
        return emb.reshape(N, Hp * Hp, self.embed_dim)


class PromptEncoder:
    def __init__(self, key, embed_dim, grid_hw):
        self.embed_dim = embed_dim
        self.grid_hw = grid_hw
        k1, k2 = jax.random.split(key)
        self.no_mask_embed = jax.random.normal(k1, (embed_dim,), jnp.float32) * 0.02
        self.dense_pe = jax.random.normal(
            k2, (1, embed_dim, grid_hw, grid_hw), jnp.float32) * 0.02

    def __call__(self, points, boxes, masks):
        sparse = jnp.zeros((1, 0, self.embed_dim), jnp.float32)
        dense = jnp.broadcast_to(
            self.no_mask_embed.reshape(1, self.embed_dim, 1, 1),
            (1, self.embed_dim, self.grid_hw, self.grid_hw))
        return sparse, dense

    def get_dense_pe(self):
        return self.dense_pe


class MaskDecoder:
    num_mask_tokens = 4

    def __init__(self, key, embed_dim):
        k1, k2, k3, k4 = jax.random.split(key, 4)
        T = self.num_mask_tokens
        self.w_mask = jax.random.normal(k1, (embed_dim, T), jnp.float32) * 0.02
        self.b_mask = jax.random.normal(k2, (T,), jnp.float32) * 0.02
        self.w_iou = jax.random.normal(k3, (embed_dim, T), jnp.float32) * 0.02
        self.b_iou = jax.random.normal(k4, (T,), jnp.float32) * 0.02

    def __call__(self, image_embeddings, image_pe, sparse_prompt_embeddings,
                 dense_prompt_embeddings, multimask_output):
        N, HW, C = image_embeddings.shape
        Hp = int(round(HW ** 0.5))
        Wp = HW // Hp
        T = self.num_mask_tokens
        # sparse_prompt_embeddings has 0 tokens (no prompts) -> contributes nothing.
        # Combine pe + dense once (tiny XLA op) so the kernel DMAs ONE shared
        # (HW, C) bias array instead of two (C, HW) arrays per image.
        pe_dense = (image_pe + dense_prompt_embeddings).reshape(C, HW).T
        # Concatenate mask + IoU projections -> single MXU pass over src.
        w_cat = jnp.concatenate([self.w_mask.T, self.w_iou.T], axis=0)   # (2T, C)
        b_cat = jnp.concatenate([self.b_mask, self.b_iou]).reshape(2 * T, 1)
        b_up = jnp.asarray(_upsample_kron(Hp, Wp, 4 * Hp, 4 * Wp))       # (HW, 16HW)

        masks_flat, iou = decoder_head_upsample(
            image_embeddings, pe_dense, w_cat, b_cat, b_up)
        low_res = masks_flat.reshape(N, T, 4 * Hp, 4 * Wp)
        iou = iou.reshape(N, T)

        sl = slice(1, None) if multimask_output else slice(0, 1)
        return low_res[:, sl], iou[:, sl]


# --------------------------------- Sam ---------------------------------------

class Sam:
    def __init__(self, image_encoder, prompt_encoder, mask_decoder,
                 pixel_mean=(123.675, 116.28, 103.53),
                 pixel_std=(58.395, 57.12, 57.375)):
        self.image_encoder = image_encoder
        self.prompt_encoder = prompt_encoder
        self.mask_decoder = mask_decoder
        self.pixel_mean = jnp.asarray(pixel_mean, jnp.float32).reshape(-1, 1, 1)
        self.pixel_std = jnp.asarray(pixel_std, jnp.float32).reshape(-1, 1, 1)
        # jit the whole forward: kills per-kernel dispatch & fuses all glue ops
        self._jit_forward = jax.jit(self._forward_train_impl,
                                    static_argnums=(1, 2))

    def __call__(self, batched_input, multimask_output, image_size):
        return self.forward_train(batched_input, multimask_output, image_size)

    def forward_train(self, batched_input, multimask_output, image_size):
        return self._jit_forward(batched_input, bool(multimask_output),
                                 int(image_size))

    def _forward_train_impl(self, batched_input, multimask_output, image_size):
        hw_size, d_size = batched_input.shape[-2], batched_input.shape[1]
        batched_input = batched_input.reshape(-1, 3, hw_size, hw_size)
        input_images = self.preprocess(batched_input)
        norm_scale = (1.0 / self.pixel_std).reshape(-1)
        norm_bias = (-self.pixel_mean / self.pixel_std).reshape(-1)
        image_embeddings = self.image_encoder(input_images, d_size,
                                              norm_scale, norm_bias)
        sparse_embeddings, dense_embeddings = self.prompt_encoder(
            points=None, boxes=None, masks=None)
        low_res_masks, iou_predictions = self.mask_decoder(
            image_embeddings=image_embeddings,
            image_pe=self.prompt_encoder.get_dense_pe(),
            sparse_prompt_embeddings=sparse_embeddings,
            dense_prompt_embeddings=dense_embeddings,
            multimask_output=multimask_output)
        masks = self.postprocess_masks(
            low_res_masks, input_size=(image_size, image_size),
            original_size=(image_size, image_size))
        return {'masks': masks, 'iou_predictions': iou_predictions,
                'low_res_logits': low_res_masks}

    def preprocess(self, x):
        # Normalization itself is folded into the patch-embed weights, so
        # padding the RAW image with the per-channel mean is exactly PyTorch's
        # "normalize then zero-pad".  One broadcast + dynamic_update_slice pass.
        N, C, H, W = x.shape
        s = self.image_encoder.img_size
        if H == s and W == s:
            return x
        canvas = jnp.broadcast_to(self.pixel_mean.reshape(1, C, 1, 1),
                                  (N, C, s, s))
        return jax.lax.dynamic_update_slice(canvas, x, (0, 0, 0, 0))

    def postprocess_masks(self, masks, input_size, original_size):
        s = self.image_encoder.img_size
        masks = bilinear_resize(masks, s, s)
        if (masks.shape[-2], masks.shape[-1]) != tuple(input_size):
            masks = masks[..., :input_size[0], :input_size[1]]
        masks = bilinear_resize(masks, original_size[0], original_size[1])
        return masks


# --------------------------------- main --------------------------------------

if __name__ == "__main__":
    key = jax.random.PRNGKey(0)
    k_in, k_enc, k_pe, k_dec = jax.random.split(key, 4)

    image_encoder = ImageEncoder(k_enc)
    hp = image_encoder.img_size // image_encoder.patch
    prompt_encoder = PromptEncoder(k_pe, image_encoder.embed_dim, hp)
    mask_decoder = MaskDecoder(k_dec, image_encoder.embed_dim)
    sam = Sam(image_encoder, prompt_encoder, mask_decoder)

    # batched_input: (B, d, 3, hw, hw) -> viewed internally as (B*d, 3, hw, hw)
    # hw < img_size exercises mean-padding; low-res masks (16x16) exercise the
    # real bilinear-resize GEMM in postprocess (16 -> 32), then crop to 24.
    B, D, HW_IN = 2, 2, 24
    batched_input = jax.random.uniform(
        k_in, (B, D, 3, HW_IN, HW_IN), jnp.float32, 0.0, 255.0)

    out = sam(batched_input, multimask_output=True, image_size=HW_IN)
    out = jax.block_until_ready(out)

    low = 4 * hp
    assert out['masks'].shape == (B * D, 3, HW_IN, HW_IN)
    assert out['low_res_logits'].shape == (B * D, 3, low, low)
    assert out['iou_predictions'].shape == (B * D, 3)
    assert all(bool(jnp.all(jnp.isfinite(v))) for v in out.values())
    print("KERNEL_OK")
</pallas_src>

<mosaic_0001>
module attributes {stable_mosaic.version = 11 : i64} {
  func.func @_decoder_head_kernel(%arg0: i32, %arg1: memref<1x16x32xf32, #tpu.memory_space<vmem>>, %arg2: memref<16x32xf32, #tpu.memory_space<vmem>>, %arg3: memref<8x32xf32, #tpu.memory_space<vmem>>, %arg4: memref<8x1xf32, #tpu.memory_space<vmem>>, %arg5: memref<16x256xf32, #tpu.memory_space<vmem>>, %arg6: memref<1x4x256xf32, #tpu.memory_space<vmem>>, %arg7: memref<1x4x1xf32, #tpu.memory_space<vmem>>) attributes {dimension_semantics = [#tpu.dimension_semantics<parallel>], iteration_bounds = array<i64: 4>, scalar_prefetch = 0 : i64, scratch_operands = 0 : i64, tpu.core_type = #tpu.core_type<tc>, window_params = [{transform_indices = @transform_0, window_bounds = array<i64: 1, 16, 32>}, {pipeline_mode = #tpu.pipeline_mode<synchronous>, transform_indices = @transform_1, window_bounds = array<i64: 16, 32>}, {pipeline_mode = #tpu.pipeline_mode<synchronous>, transform_indices = @transform_2, window_bounds = array<i64: 8, 32>}, {pipeline_mode = #tpu.pipeline_mode<synchronous>, transform_indices = @transform_3, window_bounds = array<i64: 8, 1>}, {pipeline_mode = #tpu.pipeline_mode<synchronous>, transform_indices = @transform_4, window_bounds = array<i64: 16, 256>}, {transform_indices = @transform_5, window_bounds = array<i64: 1, 4, 256>}, {transform_indices = @transform_6, window_bounds = array<i64: 1, 4, 1>}]} {
    %c0 = arith.constant 0 : index
    %c0_0 = arith.constant 0 : index
    %c0_1 = arith.constant 0 : index
    %0 = vector.load %arg1[%c0, %c0_0, %c0_1] : memref<1x16x32xf32, #tpu.memory_space<vmem>>, vector<1x16x32xf32>
    %1 = vector.shape_cast %0 : vector<1x16x32xf32> to vector<16x32xf32>
    %c0_2 = arith.constant 0 : index
    %c0_3 = arith.constant 0 : index
    %2 = vector.load %arg2[%c0_2, %c0_3] : memref<16x32xf32, #tpu.memory_space<vmem>>, vector<16x32xf32>
    %3 = arith.addf %1, %2 : vector<16x32xf32>
    %c0_4 = arith.constant 0 : index
    %c0_5 = arith.constant 0 : index
    %4 = vector.load %arg3[%c0_4, %c0_5] : memref<8x32xf32, #tpu.memory_space<vmem>>, vector<8x32xf32>
    %cst = arith.constant dense<0.000000e+00> : vector<8x16xf32>
    %5 = tpu.matmul %4, %3, %cst {dimension_numbers = #tpu.dot_dimension_numbers<[1], [1], [0], [0], [0, 0, 1, 0], [], []>} : vector<8x32xf32>, vector<16x32xf32>, vector<8x16xf32> -> vector<8x16xf32>
    %c0_6 = arith.constant 0 : index
    %c0_7 = arith.constant 0 : index
    %6 = vector.load %arg4[%c0_6, %c0_7] : memref<8x1xf32, #tpu.memory_space<vmem>>, vector<8x1xf32>
    %7 = vector.broadcast %6 : vector<8x1xf32> to vector<8x16xf32>
    %8 = arith.addf %5, %7 : vector<8x16xf32>
    %9 = vector.extract_strided_slice %8 {offsets = [4, 0], sizes = [4, 16], strides = [1, 1]} : vector<8x16xf32> to vector<4x16xf32>
    %cst_8 = arith.constant dense<0.000000e+00> : vector<4xf32>
    %10 = vector.multi_reduction <add>, %9, %cst_8 [1] : vector<4x16xf32> to vector<4xf32>
    %11 = vector.shape_cast %10 : vector<4xf32> to vector<4x1xf32>
    %cst_9 = arith.constant 1.600000e+01 : f32
    %12 = vector.broadcast %cst_9 : f32 to vector<4x1xf32>
    %13 = arith.divf %11, %12 : vector<4x1xf32>
    %c0_10 = arith.constant 0 : index
    %c0_11 = arith.constant 0 : index
    %c0_12 = arith.constant 0 : index
    %14 = vector.load %arg7[%c0_10, %c0_11, %c0_12] : memref<1x4x1xf32, #tpu.memory_space<vmem>>, vector<1x4x1xf32>
    %15 = vector.shape_cast %14 : vector<1x4x1xf32> to vector<4x1xf32>
    %16 = vector.shape_cast %13 : vector<4x1xf32> to vector<1x4x1xf32>
    tpu.vector_store %arg7[%c0_10, %c0_11, %c0_12], %16 {strides = array<i32>} : memref<1x4x1xf32, #tpu.memory_space<vmem>>, vector<1x4x1xf32>,
    %17 = vector.extract_strided_slice %8 {offsets = [0, 0], sizes = [4, 16], strides = [1, 1]} : vector<8x16xf32> to vector<4x16xf32>
    %c0_13 = arith.constant 0 : index
    %c0_14 = arith.constant 0 : index
    %18 = vector.load %arg5[%c0_13, %c0_14] : memref<16x256xf32, #tpu.memory_space<vmem>>, vector<16x256xf32>
    %cst_15 = arith.constant dense<0.000000e+00> : vector<4x256xf32>
    %19 = tpu.matmul %17, %18, %cst_15 {dimension_numbers = #tpu.dot_dimension_numbers<[1], [0], [0], [1], [0, 0, 1, 1], [], []>} : vector<4x16xf32>, vector<16x256xf32>, vector<4x256xf32> -> vector<4x256xf32>
    %c0_16 = arith.constant 0 : index
    %c0_17 = arith.constant 0 : index
    %c0_18 = arith.constant 0 : index
    %20 = vector.load %arg6[%c0_16, %c0_17, %c0_18] : memref<1x4x256xf32, #tpu.memory_space<vmem>>, vector<1x4x256xf32>
    %21 = vector.shape_cast %20 : vector<1x4x256xf32> to vector<4x256xf32>
    %22 = vector.shape_cast %19 : vector<4x256xf32> to vector<1x4x256xf32>
    tpu.vector_store %arg6[%c0_16, %c0_17, %c0_18], %22 {strides = array<i32>} : memref<1x4x256xf32, #tpu.memory_space<vmem>>, vector<1x4x256xf32>,
    return
  }
  func.func @transform_0(%arg0: i32) -> (i32, i32, i32) {
    %c0_i32 = arith.constant 0 : i32
    %c0_i32_0 = arith.constant 0 : i32
    %c0_i32_1 = arith.constant 0 : i32
    return %arg0, %c0_i32, %c0_i32_0 : i32, i32, i32
  }
  func.func @transform_1(%arg0: i32) -> (i32, i32) {
    %c0_i32 = arith.constant 0 : i32
    %c0_i32_0 = arith.constant 0 : i32
    %c0_i32_1 = arith.constant 0 : i32
    return %c0_i32, %c0_i32_0 : i32, i32
  }
  func.func @transform_2(%arg0: i32) -> (i32, i32) {
    %c0_i32 = arith.constant 0 : i32
    %c0_i32_0 = arith.constant 0 : i32
    %c0_i32_1 = arith.constant 0 : i32
    return %c0_i32, %c0_i32_0 : i32, i32
  }
  func.func @transform_3(%arg0: i32) -> (i32, i32) {
    %c0_i32 = arith.constant 0 : i32
    %c0_i32_0 = arith.constant 0 : i32
    %c0_i32_1 = arith.constant 0 : i32
    return %c0_i32, %c0_i32_0 : i32, i32
  }
  func.func @transform_4(%arg0: i32) -> (i32, i32) {
    %c0_i32 = arith.constant 0 : i32
    %c0_i32_0 = arith.constant 0 : i32
    %c0_i32_1 = arith.constant 0 : i32
    return %c0_i32, %c0_i32_0 : i32, i32
  }
  func.func @transform_5(%arg0: i32) -> (i32, i32, i32) {
    %c0_i32 = arith.constant 0 : i32
    %c0_i32_0 = arith.constant 0 : i32
    %c0_i32_1 = arith.constant 0 : i32
    return %arg0, %c0_i32, %c0_i32_0 : i32, i32, i32
  }
  func.func @transform_6(%arg0: i32) -> (i32, i32, i32) {
    %c0_i32 = arith.constant 0 : i32
    %c0_i32_0 = arith.constant 0 : i32
    %c0_i32_1 = arith.constant 0 : i32
    return %arg0, %c0_i32, %c0_i32_0 : i32, i32, i32
  }
}

module attributes {stable_mosaic.version = 11 : i64} {
  func.func @_matmul_kernel(%arg0: i32, %arg1: i32, %arg2: i32, %arg3: memref<64x256xf32, #tpu.memory_space<vmem>>, %arg4: memref<256x128xf32, #tpu.memory_space<vmem>>, %arg5: memref<1x128xf32, #tpu.memory_space<vmem>>, %arg6: memref<64x128xf32, #tpu.memory_space<vmem>>, %arg7: memref<64x128xf32, #tpu.memory_space<vmem>>) attributes {dimension_semantics = [#tpu.dimension_semantics<parallel>, #tpu.dimension_semantics<parallel>, #tpu.dimension_semantics<arbitrary>], iteration_bounds = array<i64: 1, 1, 1>, scalar_prefetch = 0 : i64, scratch_operands = 1 : i64, tpu.core_type = #tpu.core_type<tc>, window_params = [{transform_indices = @transform_0, window_bounds = array<i64: 64, 256>}, {transform_indices = @transform_1, window_bounds = array<i64: 256, 128>}, {transform_indices = @transform_2, window_bounds = array<i64: 1, 128>}, {transform_indices = @transform_3, window_bounds = array<i64: 64, 128>}]} {
    %c0_i32 = arith.constant 0 : i32
    %0 = arith.cmpi eq, %arg2, %c0_i32 : i32
    %1 = arith.extui %0 : i1 to i32
    %c0_i32_0 = arith.constant 0 : i32
    %2 = arith.cmpi ne, %1, %c0_i32_0 : i32
    scf.if %2 {
      %cst_10 = arith.constant 0.000000e+00 : f32
      %12 = vector.broadcast %cst_10 : f32 to vector<64x128xf32>
      %c0_11 = arith.constant 0 : index
      %c0_12 = arith.constant 0 : index
      %13 = vector.load %arg7[%c0_11, %c0_12] : memref<64x128xf32, #tpu.memory_space<vmem>>, vector<64x128xf32>
      tpu.vector_store %arg7[%c0_11, %c0_12], %12 {strides = array<i32>} : memref<64x128xf32, #tpu.memory_space<vmem>>, vector<64x128xf32>,
    } else {
    }
    %c0 = arith.constant 0 : index
    %c0_1 = arith.constant 0 : index
    %3 = vector.load %arg7[%c0, %c0_1] : memref<64x128xf32, #tpu.memory_space<vmem>>, vector<64x128xf32>
    %c0_2 = arith.constant 0 : index
    %c0_3 = arith.constant 0 : index
    %4 = vector.load %arg3[%c0_2, %c0_3] : memref<64x256xf32, #tpu.memory_space<vmem>>, vector<64x256xf32>
    %c0_4 = arith.constant 0 : index
    %c0_5 = arith.constant 0 : index
    %5 = vector.load %arg4[%c0_4, %c0_5] : memref<256x128xf32, #tpu.memory_space<vmem>>, vector<256x128xf32>
    %cst = arith.constant dense<0.000000e+00> : vector<64x128xf32>
    %6 = tpu.matmul %4, %5, %cst {dimension_numbers = #tpu.dot_dimension_numbers<[1], [0], [0], [1], [0, 0, 1, 1], [], []>} : vector<64x256xf32>, vector<256x128xf32>, vector<64x128xf32> -> vector<64x128xf32>
    %7 = arith.addf %3, %6 : vector<64x128xf32>
    %c0_6 = arith.constant 0 : index
    %c0_7 = arith.constant 0 : index
    %8 = vector.load %arg7[%c0_6, %c0_7] : memref<64x128xf32, #tpu.memory_space<vmem>>, vector<64x128xf32>
    tpu.vector_store %arg7[%c0_6, %c0_7], %7 {strides = array<i32>} : memref<64x128xf32, #tpu.memory_space<vmem>>, vector<64x128xf32>,
    %c0_i32_8 = arith.constant 0 : i32
    %9 = arith.cmpi eq, %arg2, %c0_i32_8 : i32
    %10 = arith.extui %9 : i1 to i32
    %c0_i32_9 = arith.constant 0 : i32
    %11 = arith.cmpi ne, %10, %c0_i32_9 : i32
    scf.if %11 {
      %c0_10 = arith.constant 0 : index
      %c0_11 = arith.constant 0 : index
      %12 = vector.load %arg7[%c0_10, %c0_11] : memref<64x128xf32, #tpu.memory_space<vmem>>, vector<64x128xf32>
      %c0_12 = arith.constant 0 : index
      %c0_13 = arith.constant 0 : index
      %13 = vector.load %arg5[%c0_12, %c0_13] : memref<1x128xf32, #tpu.memory_space<vmem>>, vector<1x128xf32>
      %14 = vector.broadcast %13 : vector<1x128xf32> to vector<64x128xf32>
      %15 = arith.addf %12, %14 : vector<64x128xf32>
      %c0_14 = arith.constant 0 : index
      %c0_15 = arith.constant 0 : index
      %16 = vector.load %arg6[%c0_14, %c0_15] : memref<64x128xf32, #tpu.memory_space<vmem>>, vector<64x128xf32>
      tpu.vector_store %arg6[%c0_14, %c0_15], %15 {strides = array<i32>} : memref<64x128xf32, #tpu.memory_space<vmem>>, vector<64x128xf32>,
    } else {
    }
    return
  }
  func.func @transform_0(%arg0: i32, %arg1: i32, %arg2: i32) -> (i32, i32) {
    %c0_i32 = arith.constant 0 : i32
    return %arg0, %arg2 : i32, i32
  }
  func.func @transform_1(%arg0: i32, %arg1: i32, %arg2: i32) -> (i32, i32) {
    %c0_i32 = arith.constant 0 : i32
    return %arg2, %arg1 : i32, i32
  }
  func.func @transform_2(%arg0: i32, %arg1: i32, %arg2: i32) -> (i32, i32) {
    %c0_i32 = arith.constant 0 : i32
    %c0_i32_0 = arith.constant 0 : i32
    return %c0_i32, %arg1 : i32, i32
  }
  func.func @transform_3(%arg0: i32, %arg1: i32, %arg2: i32) -> (i32, i32) {
    %c0_i32 = arith.constant 0 : i32
    return %arg0, %arg1 : i32, i32
  }
}

module attributes {stable_mosaic.version = 11 : i64} {
  func.func @_matmul_kernel(%arg0: i32, %arg1: i32, %arg2: i32, %arg3: memref<16x256xf32, #tpu.memory_space<vmem>>, %arg4: memref<256x256xf32, #tpu.memory_space<vmem>>, %arg5: memref<1x256xf32, #tpu.memory_space<vmem>>, %arg6: memref<16x256xf32, #tpu.memory_space<vmem>>, %arg7: memref<16x256xf32, #tpu.memory_space<vmem>>) attributes {dimension_semantics = [#tpu.dimension_semantics<parallel>, #tpu.dimension_semantics<parallel>, #tpu.dimension_semantics<arbitrary>], iteration_bounds = array<i64: 1, 4, 1>, scalar_prefetch = 0 : i64, scratch_operands = 1 : i64, tpu.core_type = #tpu.core_type<tc>, window_params = [{transform_indices = @transform_0, window_bounds = array<i64: 16, 256>}, {transform_indices = @transform_1, window_bounds = array<i64: 256, 256>}, {transform_indices = @transform_2, window_bounds = array<i64: 1, 256>}, {transform_indices = @transform_3, window_bounds = array<i64: 16, 256>}]} {
    %c0_i32 = arith.constant 0 : i32
    %0 = arith.cmpi eq, %arg2, %c0_i32 : i32
    %1 = arith.extui %0 : i1 to i32
    %c0_i32_0 = arith.constant 0 : i32
    %2 = arith.cmpi ne, %1, %c0_i32_0 : i32
    scf.if %2 {
      %cst_10 = arith.constant 0.000000e+00 : f32
      %12 = vector.broadcast %cst_10 : f32 to vector<16x256xf32>
      %c0_11 = arith.constant 0 : index
      %c0_12 = arith.constant 0 : index
      %13 = vector.load %arg7[%c0_11, %c0_12] : memref<16x256xf32, #tpu.memory_space<vmem>>, vector<16x256xf32>
      tpu.vector_store %arg7[%c0_11, %c0_12], %12 {strides = array<i32>} : memref<16x256xf32, #tpu.memory_space<vmem>>, vector<16x256xf32>,
    } else {
    }
    %c0 = arith.constant 0 : index
    %c0_1 = arith.constant 0 : index
    %3 = vector.load %arg7[%c0, %c0_1] : memref<16x256xf32, #tpu.memory_space<vmem>>, vector<16x256xf32>
    %c0_2 = arith.constant 0 : index
    %c0_3 = arith.constant 0 : index
    %4 = vector.load %arg3[%c0_2, %c0_3] : memref<16x256xf32, #tpu.memory_space<vmem>>, vector<16x256xf32>
    %c0_4 = arith.constant 0 : index
    %c0_5 = arith.constant 0 : index
    %5 = vector.load %arg4[%c0_4, %c0_5] : memref<256x256xf32, #tpu.memory_space<vmem>>, vector<256x256xf32>
    %cst = arith.constant dense<0.000000e+00> : vector<16x256xf32>
    %6 = tpu.matmul %4, %5, %cst {dimension_numbers = #tpu.dot_dimension_numbers<[1], [0], [0], [1], [0, 0, 1, 1], [], []>} : vector<16x256xf32>, vector<256x256xf32>, vector<16x256xf32> -> vector<16x256xf32>
    %7 = arith.addf %3, %6 : vector<16x256xf32>
    %c0_6 = arith.constant 0 : index
    %c0_7 = arith.constant 0 : index
    %8 = vector.load %arg7[%c0_6, %c0_7] : memref<16x256xf32, #tpu.memory_space<vmem>>, vector<16x256xf32>
    tpu.vector_store %arg7[%c0_6, %c0_7], %7 {strides = array<i32>} : memref<16x256xf32, #tpu.memory_space<vmem>>, vector<16x256xf32>,
    %c0_i32_8 = arith.constant 0 : i32
    %9 = arith.cmpi eq, %arg2, %c0_i32_8 : i32
    %10 = arith.extui %9 : i1 to i32
    %c0_i32_9 = arith.constant 0 : i32
    %11 = arith.cmpi ne, %10, %c0_i32_9 : i32
    scf.if %11 {
      %c0_10 = arith.constant 0 : index
      %c0_11 = arith.constant 0 : index
      %12 = vector.load %arg7[%c0_10, %c0_11] : memref<16x256xf32, #tpu.memory_space<vmem>>, vector<16x256xf32>
      %c0_12 = arith.constant 0 : index
      %c0_13 = arith.constant 0 : index
      %13 = vector.load %arg5[%c0_12, %c0_13] : memref<1x256xf32, #tpu.memory_space<vmem>>, vector<1x256xf32>
      %14 = vector.broadcast %13 : vector<1x256xf32> to vector<16x256xf32>
      %15 = arith.addf %12, %14 : vector<16x256xf32>
      %c0_14 = arith.constant 0 : index
      %c0_15 = arith.constant 0 : index
      %16 = vector.load %arg6[%c0_14, %c0_15] : memref<16x256xf32, #tpu.memory_space<vmem>>, vector<16x256xf32>
      tpu.vector_store %arg6[%c0_14, %c0_15], %15 {strides = array<i32>} : memref<16x256xf32, #tpu.memory_space<vmem>>, vector<16x256xf32>,
    } else {
    }
    return
  }
  func.func @transform_0(%arg0: i32, %arg1: i32, %arg2: i32) -> (i32, i32) {
    %c0_i32 = arith.constant 0 : i32
    return %arg0, %arg2 : i32, i32
  }
  func.func @transform_1(%arg0: i32, %arg1: i32, %arg2: i32) -> (i32, i32) {
    %c0_i32 = arith.constant 0 : i32
    return %arg2, %arg1 : i32, i32
  }
  func.func @transform_2(%arg0: i32, %arg1: i32, %arg2: i32) -> (i32, i32) {
    %c0_i32 = arith.constant 0 : i32
    %c0_i32_0 = arith.constant 0 : i32
    return %c0_i32, %arg1 : i32, i32
  }
  func.func @transform_3(%arg0: i32, %arg1: i32, %arg2: i32) -> (i32, i32) {
    %c0_i32 = arith.constant 0 : i32
    return %arg0, %arg1 : i32, i32
  }
}

</mosaic_0001>

<bundles_post_ra>
// kernel: mul.5
= control target key start
LH: loop header
LB: loop body
LE: loop exit
PB: predicated region body
PF: predicated region fallthrough
CT: control target
= control target key end

     0   :  { %vm8_vm0 = vcmask 523264   ;;  %s23_s8 = smov 64   ;;  %vm14_vm1 = vcmask 1048064   ;;  %s40_s0 = inlined_call_operand.vmem [shape: f32[3,64], index: 0, kind: input, shape index: {}]   ;;  %s41_s1 = inlined_call_operand.vmem [shape: f32[192], index: 1, kind: output, shape index: {}]  }
   0x1   :  { %v4_v0 = vld [vmem:[%s40_s0] sm:$0xf]  ;;  %s6_s0 = smov 3 }
   0x2   :  { %5 = vst [vmem:[#allocation1] sm:$0xf] %v4_v0 }
   0x9   :  { %v11_v1 = vld [vmem:[#allocation1 + $0x1] sm:$0x1]   ;;  %v7_v2 = vld [vmem:[#allocation1] ss:$2 sm:%s6_s0]  }
   0xa   :  { %12 = vrot.lane.b32.xlu0 %v11_v1, %s23_s8  ;;  %9 = vst.msk [vmem:[#allocation0] sm:$0x3] %vm8_vm0, %v7_v2  }
  0x7c   :  { %v13_v3 = vpop.permute.xlu0 %12  }
  0x7d   :  { %15 = vst.msk [vmem:[#allocation0] sm:$0x1] %vm14_vm1, %v13_v3  }
  0x84   :  { %v19_v4 = vld [vmem:[#allocation0] sm:$0x3] }
  0x85   :  { %21 = vst [vmem:[%s41_s1] sm:$0x3] %v19_v4 }

// kernel: _forward_train_impl.3
= control target key start
LH: loop header
LB: loop body
LE: loop exit
PB: predicated region body
PF: predicated region fallthrough
CT: control target
= control target key end

     0   :  { %s537_s1 = inlined_call_operand.vmem [shape: f32[256,128], index: 1, kind: input, shape index: {}]   ;;  %s538_s0 = inlined_call_operand.vmem [shape: f32[64,256], index: 0, kind: input, shape index: {}]   ;;  %s539_s2 = inlined_call_operand.vmem [shape: f32[1,128], index: 2, kind: input, shape index: {}]   ;;  %s540_s3 = inlined_call_operand.vmem [shape: f32[64,128], index: 3, kind: output, shape index: {}]  }
   0x1   :  { %v66_v0 = vld [vmem:[%s537_s1 + $0x80] sm:$0xff]  ;;  %v67_v1 = vld [vmem:[%s537_s1 + $0x88] sm:$0xff]  ;;  %v68_v5 = vld [vmem:[%s537_s1 + $0x90] sm:$0xff] }
   0x2   :  { %v50_v2 = vld [vmem:[%s537_s1] sm:$0xff]  ;;  %v298_v3 = vpack.c.bf16 %v67_v1, %v66_v0  ;;  %v51_v4 = vld [vmem:[%s537_s1 + $0x8] sm:$0xff]  ;;  %v69_v6 = vld [vmem:[%s537_s1 + $0x98] sm:$0xff] }
   0x3   :  { %v300_v7 = vpack.c.bf16 %v51_v4, %v50_v2  ;;  %v302_v8 = vpack.c.bf16 %v69_v6, %v68_v5  ;;  %v52_v9 = vld [vmem:[%s537_s1 + $0x10] sm:$0xff]  ;;  %v53_v10 = vld [vmem:[%s537_s1 + $0x18] sm:$0xff]  ;;  %v70_v11 = vld [vmem:[%s537_s1 + $0xa0] sm:$0xff] }
   0x4   :  { %299 = vmatprep.subr.bf16.mxu0 %v298_v3  ;;  %330 = vmatprep.subr.bf16.mxu1 %v298_v3  ;;  %v71_v12 = vld [vmem:[%s537_s1 + $0xa8] sm:$0xff]  ;;  %v304_v13 = vpack.c.bf16 %v53_v10, %v52_v9  ;;  %v54_v15 = vld [vmem:[%s537_s1 + $0x20] sm:$0xff]  ;;  %v72_v17 = vld [vmem:[%s537_s1 + $0xb0] sm:$0xff] }
   0x5   :  { %301 = vmatpush3.bf16.msra.mxu0 %v300_v7  ;;  %338 = vmatpush3.bf16.msra.mxu1 %v300_v7  ;;  %v306_v14 = vpack.c.bf16 %v71_v12, %v70_v11  ;;  %v55_v16 = vld [vmem:[%s537_s1 + $0x28] sm:$0xff]  ;;  %v73_v18 = vld [vmem:[%s537_s1 + $0xb8] sm:$0xff]  ;;  %v56_v21 = vld [vmem:[%s537_s1 + $0x30] sm:$0xff] }
   0x6   :  { %303 = vmatprep.subr.bf16.mxu0 %v302_v8  ;;  %331 = vmatprep.subr.bf16.mxu1 %v302_v8  ;;  %v308_v19 = vpack.c.bf16 %v55_v16, %v54_v15  ;;  %v310_v20 = vpack.c.bf16 %v73_v18, %v72_v17  ;;  %v57_v22 = vld [vmem:[%s537_s1 + $0x38] sm:$0xff]  ;;  %v74_v23 = vld [vmem:[%s537_s1 + $0xc0] sm:$0xff]  ;;  %v75_v24 = vld [vmem:[%s537_s1 + $0xc8] sm:$0xff] }
   0x7   :  { %v35_v25 = vld [vmem:[%s538_s0 + $0x8] sm:$0xff]  ;;  %v312_v27 = vpack.c.bf16 %v57_v22, %v56_v21  ;;  %v314_v28 = vpack.c.bf16 %v75_v24, %v74_v23  ;;  %v58_v29 = vld [vmem:[%s537_s1 + $0x40] sm:$0xff]  ;;  %v76_v31 = vld [vmem:[%s537_s1 + $0xd0] sm:$0xff] }
   0x8   :  { %146 = vmatprep.mubr.f32.mxu0 %v35_v25  ;;  %v43_v26 = vld [vmem:[%s538_s0 + $0x48] sm:$0xff]  ;;  %v77_v32 = vld [vmem:[%s537_s1 + $0xd8] sm:$0xff]  ;;  %v60_v35 = vld [vmem:[%s537_s1 + $0x50] sm:$0xff] }
   0x9   :  { %305 = vmatpush3.bf16.msra.mxu0 %v304_v13  ;;  %339 = vmatpush3.bf16.msra.mxu1 %v304_v13  ;;  %v59_v30 = vld [vmem:[%s537_s1 + $0x48] sm:$0xff]  ;;  %v318_v34 = vpack.c.bf16 %v77_v32, %v76_v31  ;;  %v61_v36 = vld [vmem:[%s537_s1 + $0x58] sm:$0xff]  ;;  %v78_v37 = vld [vmem:[%s537_s1 + $0xe0] sm:$0xff] }
   0xa   :  { %307 = vmatprep.subr.bf16.mxu0 %v306_v14  ;;  %332 = vmatprep.subr.bf16.mxu1 %v306_v14  ;;  %v316_v33 = vpack.c.bf16 %v59_v30, %v58_v29  ;;  %v79_v38 = vld [vmem:[%s537_s1 + $0xe8] sm:$0xff]  ;;  %v320_v39 = vpack.c.bf16 %v61_v36, %v60_v35  ;;  %v62_v41 = vld [vmem:[%s537_s1 + $0x60] sm:$0xff]  ;;  %v80_v43 = vld [vmem:[%s537_s1 + $0xf0] sm:$0xff] }
   0xb   :  { %166 = vmatprep.mubr.f32.mxu1 %v43_v26  ;;  %v322_v40 = vpack.c.bf16 %v79_v38, %v78_v37  ;;  %v63_v42 = vld [vmem:[%s537_s1 + $0x68] sm:$0xff]  ;;  %v81_v44 = vld [vmem:[%s537_s1 + $0xf8] sm:$0xff]  ;;  %v64_v47 = vld [vmem:[%s537_s1 + $0x70] sm:$0xff] }
   0xc   :  { %v324_v45 = vpack.c.bf16 %v63_v42, %v62_v41  ;;  %v326_v46 = vpack.c.bf16 %v81_v44, %v80_v43  ;;  %v65_v48 = vld [vmem:[%s537_s1 + $0x78] sm:$0xff]  ;;  %v34_v50 = vld [vmem:[%s538_s0] sm:$0xff]  ;;  %v36_v54 = vld [vmem:[%s538_s0 + $0x10] sm:$0xff] }
   0xd   :  { %309 = vmatpush3.bf16.msra.mxu0 %v308_v19  ;;  %340 = vmatpush3.bf16.msra.mxu1 %v308_v19  ;;  %v328_v49 = vpack.c.bf16 %v65_v48, %v64_v47  ;;  %v42_v51 = vld [vmem:[%s538_s0 + $0x40] sm:$0xff]  ;;  %v37_v52 = vld [vmem:[%s538_s0 + $0x18] sm:$0xff]  ;;  %v44_v55 = vld [vmem:[%s538_s0 + $0x50] sm:$0xff] }
   0xe   :  { %311 = vmatprep.subr.bf16.mxu0 %v310_v20  ;;  %333 = vmatprep.subr.bf16.mxu1 %v310_v20  ;;  %v45_v53 = vld [vmem:[%s538_s0 + $0x58] sm:$0xff]  ;;  %v39_v56 = vld [vmem:[%s538_s0 + $0x28] sm:$0xff]  ;;  %v38_v58 = vld [vmem:[%s538_s0 + $0x20] sm:$0xff] }
   0xf   :  { %v47_v57 = vld [vmem:[%s538_s0 + $0x68] sm:$0xff]  ;;  %v46_v59 = vld [vmem:[%s538_s0 + $0x60] sm:$0xff]  ;;  %v41_v60 = vld [vmem:[%s538_s0 + $0x38] sm:$0xff] }
  0x10   :  { %v49_v61 = vld [vmem:[%s538_s0 + $0x78] sm:$0xff]  ;;  %v40_v62 = vld [vmem:[%s538_s0 + $0x30] sm:$0xff]  ;;  %v241_v3 = vld [vmem:[%s539_s2] ss:$0 sm:$0xff] }
  0x11   :  { %313 = vmatpush3.bf16.msra.mxu0 %v312_v27  ;;  %341 = vmatpush3.bf16.msra.mxu1 %v312_v27  ;;  %v48_v63 = vld [vmem:[%s538_s0 + $0x70] sm:$0xff] }
  0x12   :  { %315 = vmatprep.subr.bf16.mxu0 %v314_v28  ;;  %334 = vmatprep.subr.bf16.mxu1 %v314_v28 }
  0x15   :  { %317 = vmatpush3.bf16.msra.mxu0 %v316_v33  ;;  %342 = vmatpush3.bf16.msra.mxu1 %v316_v33 }
  0x16   :  { %319 = vmatprep.subr.bf16.mxu0 %v318_v34  ;;  %335 = vmatprep.subr.bf16.mxu1 %v318_v34 }
  0x19   :  { %321 = vmatpush3.bf16.msra.mxu0 %v320_v39  ;;  %343 = vmatpush3.bf16.msra.mxu1 %v320_v39 }
  0x1a   :  { %323 = vmatprep.subr.bf16.mxu0 %v322_v40  ;;  %336 = vmatprep.subr.bf16.mxu1 %v322_v40 }
  0x1d   :  { %325 = vmatpush3.bf16.msra.mxu0 %v324_v45  ;;  %344 = vmatpush3.bf16.msra.mxu1 %v324_v45 }
  0x1e   :  { %327 = vmatprep.subr.bf16.mxu0 %v326_v46  ;;  %337 = vmatprep.subr.bf16.mxu1 %v326_v46 }
  0x21   :  { %329 = vmatpush3.bf16.msra.mxu0 %v328_v49  ;;  %345 = vmatpush3.bf16.msra.mxu1 %v328_v49 }
  0x24   :  { %147 = vmatmul.mubr.f32.vlgmr.msra.gmra.mrb[0].mxu0 %v34_v50  ;;  %167 = vmatmul.mubr.f32.vlgmr.msra.gmra.mrb[0].mxu1 %v42_v51 }
  0x25   :  { %151 = vmatprep.mubr.f32.mxu0 %v37_v52  ;;  %171 = vmatprep.mubr.f32.mxu1 %v45_v53 }
  0x28   :  { %152 = vmatmul.mubr.f32.gmra.mrb[2].mxu0 %v36_v54  ;;  %172 = vmatmul.mubr.f32.gmra.mrb[2].mxu1 %v44_v55 }
  0x29   :  { %156 = vmatprep.mubr.f32.mxu0 %v39_v56  ;;  %176 = vmatprep.mubr.f32.mxu1 %v47_v57 }
  0x2c   :  { %157 = vmatmul.mubr.f32.gmra.mrb[4].mxu0 %v38_v58  ;;  %177 = vmatmul.mubr.f32.gmra.mrb[4].mxu1 %v46_v59 }
  0x2d   :  { %161 = vmatprep.mubr.f32.mxu0 %v41_v60  ;;  %181 = vmatprep.mubr.f32.mxu1 %v49_v61 }
  0x30   :  { %162 = vmatmul.mubr.f32.gmra.mrb[6].mxu0 %v40_v62  ;;  %182 = vmatmul.mubr.f32.gmra.mrb[6].mxu1 %v48_v63 }
  0xf7   :  { %v274_v0 = vpop.f32.mrb[0].mxu0  ;;  %v286_v1 = vpop.f32.mrb[0].mxu1 }
  0xf8   :  { %v275_v2 = vpop.f32.mrb[1].mxu0  ;;  %v287_v4 = vpop.f32.mrb[1].mxu1 }
  0xf9   :  { %v276_v5 = vadd.f32 %v275_v2, %v274_v0  ;;  %v288_v6 = vadd.f32 %v287_v4, %v286_v1 }
  0xfb   :  { %v221_v7 = vadd.f32 %v276_v5, %v241_v3  ;;  %v225_v8 = vadd.f32 %v288_v6, %v241_v3  ;;  %v277_v9 = vpop.f32.mrb[2].mxu0  ;;  %v289_v10 = vpop.f32.mrb[2].mxu1 }
  0xfc   :  { %v278_v11 = vpop.f32.mrb[3].mxu0  ;;  %v290_v12 = vpop.f32.mrb[3].mxu1 }
  0xfd   :  { %229 = vst [vmem:[%s540_s3] sm:$0xff] %v221_v7  ;;  %233 = vst [vmem:[%s540_s3 + $0x20] sm:$0xff] %v225_v8  ;;  %v279_v13 = vadd.f32 %v278_v11, %v277_v9  ;;  %v291_v14 = vadd.f32 %v290_v12, %v289_v10 }
  0xff   :  { %v222_v15 = vadd.f32 %v279_v13, %v241_v3  ;;  %v226_v16 = vadd.f32 %v291_v14, %v241_v3  ;;  %v280_v17 = vpop.f32.mrb[4].mxu0  ;;  %v292_v18 = vpop.f32.mrb[4].mxu1 }
 0x100   :  { %v281_v19 = vpop.f32.mrb[5].mxu0  ;;  %v293_v20 = vpop.f32.mrb[5].mxu1 }
 0x101   :  { %230 = vst [vmem:[%s540_s3 + $0x8] sm:$0xff] %v222_v15  ;;  %234 = vst [vmem:[%s540_s3 + $0x28] sm:$0xff] %v226_v16  ;;  %v282_v21 = vadd.f32 %v281_v19, %v280_v17  ;;  %v294_v22 = vadd.f32 %v293_v20, %v292_v18 }
 0x103   :  { %v223_v23 = vadd.f32 %v282_v21, %v241_v3  ;;  %v227_v24 = vadd.f32 %v294_v22, %v241_v3  ;;  %v283_v25 = vpop.f32.mrb[6].mxu0  ;;  %v295_v26 = vpop.f32.mrb[6].mxu1 }
 0x104   :  { %v284_v27 = vpop.f32.mrb[7].mxu0  ;;  %v296_v28 = vpop.f32.mrb[7].mxu1 }
 0x105   :  { %231 = vst [vmem:[%s540_s3 + $0x10] sm:$0xff] %v223_v23  ;;  %235 = vst [vmem:[%s540_s3 + $0x30] sm:$0xff] %v227_v24  ;;  %v285_v29 = vadd.f32 %v284_v27, %v283_v25  ;;  %v297_v30 = vadd.f32 %v296_v28, %v295_v26 }
 0x107   :  { %v224_v31 = vadd.f32 %v285_v29, %v241_v3  ;;  %v228_v32 = vadd.f32 %v297_v30, %v241_v3 }
 0x109   :  { %232 = vst [vmem:[%s540_s3 + $0x18] sm:$0xff] %v224_v31  ;;  %236 = vst [vmem:[%s540_s3 + $0x38] sm:$0xff] %v228_v32 }

// kernel: _forward_train_impl.4
= control target key start
LH: loop header
LB: loop body
LE: loop exit
PB: predicated region body
PF: predicated region fallthrough
CT: control target
= control target key end

     0   :  { %s630_s21 = smov 0   ;;  %s679_s0 = inlined_call_operand.vmem [shape: f32[4,16,32], index: 0, kind: input, shape index: {}]   ;;  %s680_s1 = inlined_call_operand.vmem [shape: f32[16,32], index: 1, kind: input, shape index: {}]   ;;  %s681_s2 = inlined_call_operand.vmem [shape: f32[8,32], index: 2, kind: input, shape index: {}]   ;;  %s682_s3 = inlined_call_operand.vmem [shape: f32[8,1], index: 3, kind: input, shape index: {}]   ;;  %s683_s4 = inlined_call_operand.vmem [shape: f32[16,256], index: 4, kind: input, shape index: {}]   ;;  %s684_s5 = inlined_call_operand.vmem [shape: f32[4,4,256], index: 5, kind: output, shape index: {0}]   ;;  %s685_s6 = inlined_call_operand.vmem [shape: f32[4,4,1], index: 6, kind: output, shape index: {1}]  }
   0x1 LB: > { %s534_s22 = sadd.s32 4294967295, %s589_s21   ;;  %p538_p0 = scmp.ge.s32.totalorder %s589_s21, 1  ;;  %s589_s21 = sphi %s630_s21, %s17_s21  }
   0x2   : > { %p215_p1 = scmp.lt.s32.totalorder %s589_s21, 5 }
   0x4   : > { %p216_p2 = pnand %p538_p0, %p215_p1 }
   0x5   : > { %p249_p3 = scmp.lt.s32.totalorder (!%p216_p2), %s534_s22, 3  ;;  %v591_v0 = vmov (!%p216_p2), 0.0|0.0   ;;  %v270_v1 = vld [vmem:[%s682_s3] sm:$0xff] (!%p216_p2)  ;;  %vm592_vm0 = vmmov (!%p216_p2), 0   ;;  %v593_v2 = vmov (!%p216_p2), 0.0   ;;  %v594_v3 = vmov (!%p216_p2), 0  }
   0x6   : > { %219 = sbr.rel (%p216_p2) target bundleno = 458 (0x1ca), region = 40  ;;  %562 = vmatprep.subr.bf16.mxu0 (!%p216_p2), %v591_v0  ;;  %559 = vmatprep.mubr.msk.f32.mxu0 (!%p216_p2), %vm592_vm0, %v593_v2  ;;  %v365_v4 = vld [vmem:[%s683_s4 + $0x8] sm:$0xff] (!%p216_p2)  ;;  %v367_v5 = vld [vmem:[%s683_s4 + $0x18] sm:$0xff] (!%p216_p2)  ;;  %v364_v6 = vld [vmem:[%s683_s4] sm:$0xff] (!%p216_p2)  ;;  %vm276_vm1 = vcmask (!%p216_p2), 261120   ;;  %vm368_vm3 = vcmask (!%p216_p2), 130048  }
   0x7   : > { %582 = vset.pattern.permute.xlu0 (!%p216_p2), %v594_v3  ;;  %v566_v7 = vpack.c.bf16 (!%p216_p2), %v367_v5, %v365_v4  ;;  %v366_v8 = vld [vmem:[%s683_s4 + $0x10] sm:$0xff] (!%p216_p2)  ;;  %436 = vmatprep.mubr.f32.mxu1 (!%p216_p2), %v593_v2  ;;  %v265_v9 = vld [vmem:[%s680_s1] sm:$0xff] (!%p216_p2)  ;;  %v266_v10 = vld [vmem:[%s680_s1 + $0x8] sm:$0xff] (!%p216_p2)  ;;  %vm356_vm4 = vcmask (!%p216_p2), 130052   ;;  %vm362_vm5 = vcmask (!%p216_p2), 7172  }
   0x8   : > { %273 = vperm.xlu0 (!%p216_p2), %582, %v270_v1   ;;  %v568_v11 = vpack.c.bf16 (!%p216_p2), %v366_v8, %v364_v6  ;;  %vm564_vm2 = vmpackc.low (!%p216_p2), %vm276_vm1, %vm276_vm1  ;;  %v269_v17 = vld [vmem:[%s681_s2] sm:$0xff] (!%p216_p2) }
   0x9   : > { %567 = vmatprep.subr.bf16.mxu1 (!%p216_p2), %v566_v7 }
   0xa   : > { %569 = vmatpush1.bf16.msra.mxu1 (!%p216_p2), %v568_v11 }
   0xd   : > { %s687_s22 = smov (!%p249_p3, %s534_s22), 3 }
   0xe   : > { %s550_s9 = sshll.u32 %s687_s22, 4  ;;  %s543_s19 = sshll.u32 %s687_s22, 2 }
   0xf   : > { %s253_s16 = scalar_lea.vmem %s679_s0, %s550_s9  ;;  %s262_s24 = scalar_lea.vmem %s685_s6, %s543_s19 }
  0x10   : > { %v263_v12 = vld [vmem:[%s253_s16] sm:$0xff]  ;;  %v264_v13 = vld [vmem:[%s253_s16 + $0x8] sm:$0xff]  ;;  %s551_s25 = sshll.u32 %s687_s22, 3 }
  0x11   : > { %v267_v14 = vadd.f32 %v265_v9, %v263_v12  ;;  %v268_v15 = vadd.f32 %v266_v10, %v264_v13  ;;  %s258_s28 = scalar_lea.vmem %s684_s5, %s551_s25 }
  0x13   : > { %v563_v16 = vpack.c.bf16 %v268_v15, %v267_v14 }
  0x15   : > { %565 = vmatpush3.bf16.xpose.msk.msra.mxu0 %vm564_vm2, %v563_v16 }
  0x1c   : > { %560 = vmatmul.mubr.msk.f32.vlgmr.msra.gmra.mrb[0].mxu0 %vm276_vm1, %v269_v17 }
  0x87   : > { %v274_v18 = vpop.permute.xlu0 %273 }
  0xef   : > { %v352_v19 = vpop.f32.mrb[0].mxu0 }
  0xf0   : > { %v353_v20 = vadd.f32 %v352_v19, %v274_v18  ;;  %v561_v21 = vpop.f32.mrb[1].mxu0 }
  0xf2   : > { %547 = vmatmul.mubr.msk.f32.vlgmr.msra.gmra.mrb[0].mxu1 %vm368_vm3, %v353_v20  ;;  %v357_v22 = vsel %vm356_vm4, %v353_v20, 0.0 }
  0xf3   : > { %358 = vadd.xlane.f32.xlu0 %v357_v22 }
 0x180   : > { %v359_v23 = vpop.xlane.xlu0 %358 }
 0x181   : > { %v361_v24 = vmul.f32 0.0625, %v359_v23 }
 0x183   : > { %363 = vst.msk [vmem:[%s262_s24 - $0x4] sm:$0xf0] %vm362_vm5, %v361_v24 }
 0x1c5   : > { %v438_v25 = vpop.f32.mrb[0].mxu1 }
 0x1c6   : > { %v440_v26 = vpop.f32.mrb[1].mxu1 }
 0x1c7   : > { %v445_v27 = vcombine.low %v438_v25, %v440_v26 }
 0x1c9   : > { %447 = vst [vmem:[%s258_s28] sm:$0xff] %v445_v27 }
 0x1ca PF: > { %s17_s21 = sadd.s32 1, %s589_s21  }
 0x1cb   : > { %p14_p4 = scmp.ge.s32.totalorder %s17_s21, 6  }
 0x1cd   :  { %16 = sbr.rel (!%p14_p4) target bundleno = 1 (0x1), region = 82 }

// kernel: _forward_train_impl.5
= control target key start
LH: loop header
LB: loop body
LE: loop exit
PB: predicated region body
PF: predicated region fallthrough
CT: control target
= control target key end

     0   :  { %s948_s12 = smov 0   ;;  %s950_s13 = smov 0   ;;  %s1238_s0 = inlined_call_operand.vmem [shape: f32[16,256], index: 0, kind: input, shape index: {}]   ;;  %s1239_s1 = inlined_call_operand.vmem [shape: f32[256,1024], index: 1, kind: input, shape index: {}]   ;;  %s1240_s2 = inlined_call_operand.vmem [shape: f32[1,1024], index: 2, kind: input, shape index: {}]   ;;  %s1241_s3 = inlined_call_operand.vmem [shape: f32[16,1024], index: 3, kind: output, shape index: {}]  }
   0x1   :  { %s952_s14 = smov 0   ;;  %s954_s15 = smov 0  }
   0x2   :  { %s956_s16 = smov 0  }
   0x3 LB: > { %s28_s17 = sadd.s32 1, %s922_s15  ;;  %s733_s18 = sadd.s32 4294967295, %s926_s16   ;;  %s926_s16 = sphi %s956_s16, %s13_s16   ;;  %s922_s15 = sphi %s954_s15, %s1246_s15   ;;  %s918_s14 = sphi %s952_s14, %s1245_s14   ;;  %s914_s13 = sphi %s950_s13, %s1244_s13   ;;  %s910_s12 = sphi %s948_s12, %s1243_s12  }
   0x4   : > { %p30_p0 = scmp.ge.s32.totalorder %s28_s17, 4  ;;  %p76_p1 = scmp.ne.s32.totalorder %s914_s13, %s910_s12 }
   0x5   : > { %p77_p2 = scmp.eq.s32.totalorder %s926_s16, 0  ;;  %p134_p4 = scmp.eq.s32.totalorder %s733_s18, 3 }
   0x6   : > { %s1248_s17 = smov (%p30_p0, %s28_s17), 0  ;;  %s69_s20 = sadd.s32 1, %s914_s13 }
   0x7   : > { %p78_p3 = por %p77_p2, %p76_p1  ;;  %s65_s19 = ssub.s32 %s922_s15, %s1248_s17 }
   0x8   : > { %p67_p5 = scmp.eq.s32.totalorder %s65_s19, 0  ;;  %p983_p6 = por %p134_p4, %p76_p1 }
   0x9   : > { %p737_p7 = scmp.ge.s32.totalorder %s926_s16, 4 }
   0xa   : > { %s988_s22 = scalar_select %p67_p5, %s914_s13, %s69_s20  }
   0xb   : > { %171 = sbr.rel (%p737_p7) target bundleno = 54 (0x36), region = 20 }
  0x12   : > { %174 = sbr.rel (!%p78_p3) target bundleno = 54 (0x36), region = 24  ;;  %s176_s23 = sand.u32 (%p78_p3), 1, %s914_s13  }
  0x13   : > { %s750_s24 = sshll.u32 (%p78_p3), %s922_s15, 4  ;;  %s738_s25 = sshll.u32 (%p78_p3), %s176_s23, 9 }
  0x14   : > { %s996_s28 = scalar_lea.vmem (%p78_p3), %s1239_s1, %s750_s24  ;;  %s1001_s29 = scalar_lea.vmem (%p78_p3), [#allocation3], %s738_s25 }
  0x15   : > { %v197_v0 = vld [vmem:[%s996_s28] sm:$0xff] (%p78_p3)  ;;  %v199_v1 = vld [vmem:[%s996_s28 + $0x8] sm:$0xff] (%p78_p3) }
  0x16   : > { %v201_v2 = vld [vmem:[%s996_s28 + $0x40] sm:$0xff] (%p78_p3)  ;;  %198 = vst [vmem:[%s1001_s29] sm:$0xff] (%p78_p3), %v197_v0  ;;  %200 = vst [vmem:[%s1001_s29 + $0x8] sm:$0xff] (%p78_p3), %v199_v1  ;;  %v203_v3 = vld [vmem:[%s996_s28 + $0x48] sm:$0xff] (%p78_p3) }
  0x17   : > { %202 = vst [vmem:[%s1001_s29 + $0x10] sm:$0xff] (%p78_p3), %v201_v2  ;;  %v205_v4 = vld [vmem:[%s996_s28 + $0x80] sm:$0xff] (%p78_p3)  ;;  %v207_v5 = vld [vmem:[%s996_s28 + $0x88] sm:$0xff] (%p78_p3)  ;;  %204 = vst [vmem:[%s1001_s29 + $0x18] sm:$0xff] (%p78_p3), %v203_v3 }
  0x18   : > { %206 = vst [vmem:[%s1001_s29 + $0x20] sm:$0xff] (%p78_p3), %v205_v4  ;;  %208 = vst [vmem:[%s1001_s29 + $0x28] sm:$0xff] (%p78_p3), %v207_v5  ;;  %v209_v6 = vld [vmem:[%s996_s28 + $0xc0] sm:$0xff] (%p78_p3)  ;;  %v211_v7 = vld [vmem:[%s996_s28 + $0xc8] sm:$0xff] (%p78_p3) }
  0x19   : > { %v213_v8 = vld [vmem:[%s996_s28 + $0x100] sm:$0xff]  ;;  %210 = vst [vmem:[%s1001_s29 + $0x30] sm:$0xff] %v209_v6  ;;  %212 = vst [vmem:[%s1001_s29 + $0x38] sm:$0xff] %v211_v7  ;;  %v215_v9 = vld [vmem:[%s996_s28 + $0x108] sm:$0xff] }
  0x1a   : > { %214 = vst [vmem:[%s1001_s29 + $0x40] sm:$0xff] %v213_v8  ;;  %v217_v10 = vld [vmem:[%s996_s28 + $0x140] sm:$0xff]  ;;  %v219_v11 = vld [vmem:[%s996_s28 + $0x148] sm:$0xff]  ;;  %216 = vst [vmem:[%s1001_s29 + $0x48] sm:$0xff] %v215_v9 }
  0x1b   : > { %218 = vst [vmem:[%s1001_s29 + $0x50] sm:$0xff] %v217_v10  ;;  %220 = vst [vmem:[%s1001_s29 + $0x58] sm:$0xff] %v219_v11  ;;  %v221_v12 = vld [vmem:[%s996_s28 + $0x180] sm:$0xff]  ;;  %v223_v13 = vld [vmem:[%s996_s28 + $0x188] sm:$0xff] }
  0x1c   : > { %v225_v14 = vld [vmem:[%s996_s28 + $0x1c0] sm:$0xff]  ;;  %222 = vst [vmem:[%s1001_s29 + $0x60] sm:$0xff] %v221_v12  ;;  %224 = vst [vmem:[%s1001_s29 + $0x68] sm:$0xff] %v223_v13  ;;  %v227_v15 = vld [vmem:[%s996_s28 + $0x1c8] sm:$0xff] }
  0x1d   : > { %226 = vst [vmem:[%s1001_s29 + $0x70] sm:$0xff] %v225_v14  ;;  %v229_v16 = vld [vmem:[%s996_s28 + $0x200] sm:$0xff]  ;;  %v231_v17 = vld [vmem:[%s996_s28 + $0x208] sm:$0xff]  ;;  %228 = vst [vmem:[%s1001_s29 + $0x78] sm:$0xff] %v227_v15 }
  0x1e   : > { %230 = vst [vmem:[%s1001_s29 + $0x80] sm:$0xff] %v229_v16  ;;  %232 = vst [vmem:[%s1001_s29 + $0x88] sm:$0xff] %v231_v17  ;;  %v233_v18 = vld [vmem:[%s996_s28 + $0x240] sm:$0xff]  ;;  %v235_v19 = vld [vmem:[%s996_s28 + $0x248] sm:$0xff] }
  0x1f   : > { %v237_v20 = vld [vmem:[%s996_s28 + $0x280] sm:$0xff]  ;;  %234 = vst [vmem:[%s1001_s29 + $0x90] sm:$0xff] %v233_v18  ;;  %236 = vst [vmem:[%s1001_s29 + $0x98] sm:$0xff] %v235_v19  ;;  %v239_v21 = vld [vmem:[%s996_s28 + $0x288] sm:$0xff] }
  0x20   : > { %238 = vst [vmem:[%s1001_s29 + $0xa0] sm:$0xff] %v237_v20  ;;  %v241_v22 = vld [vmem:[%s996_s28 + $0x2c0] sm:$0xff]  ;;  %v243_v23 = vld [vmem:[%s996_s28 + $0x2c8] sm:$0xff]  ;;  %240 = vst [vmem:[%s1001_s29 + $0xa8] sm:$0xff] %v239_v21 }
  0x21   : > { %242 = vst [vmem:[%s1001_s29 + $0xb0] sm:$0xff] %v241_v22  ;;  %244 = vst [vmem:[%s1001_s29 + $0xb8] sm:$0xff] %v243_v23  ;;  %v245_v24 = vld [vmem:[%s996_s28 + $0x300] sm:$0xff]  ;;  %v247_v25 = vld [vmem:[%s996_s28 + $0x308] sm:$0xff] }
  0x22   : > { %v249_v26 = vld [vmem:[%s996_s28 + $0x340] sm:$0xff]  ;;  %246 = vst [vmem:[%s1001_s29 + $0xc0] sm:$0xff] %v245_v24  ;;  %248 = vst [vmem:[%s1001_s29 + $0xc8] sm:$0xff] %v247_v25  ;;  %v251_v27 = vld [vmem:[%s996_s28 + $0x348] sm:$0xff] }
  0x23   : > { %250 = vst [vmem:[%s1001_s29 + $0xd0] sm:$0xff] %v249_v26  ;;  %v253_v28 = vld [vmem:[%s996_s28 + $0x380] sm:$0xff]  ;;  %v255_v29 = vld [vmem:[%s996_s28 + $0x388] sm:$0xff]  ;;  %252 = vst [vmem:[%s1001_s29 + $0xd8] sm:$0xff] %v251_v27 }
  0x24   : > { %254 = vst [vmem:[%s1001_s29 + $0xe0] sm:$0xff] %v253_v28  ;;  %256 = vst [vmem:[%s1001_s29 + $0xe8] sm:$0xff] %v255_v29  ;;  %v257_v30 = vld [vmem:[%s996_s28 + $0x3c0] sm:$0xff]  ;;  %v259_v31 = vld [vmem:[%s996_s28 + $0x3c8] sm:$0xff] }
  0x25   : > { %v261_v32 = vld [vmem:[%s996_s28 + $0x400] sm:$0xff]  ;;  %258 = vst [vmem:[%s1001_s29 + $0xf0] sm:$0xff] %v257_v30  ;;  %260 = vst [vmem:[%s1001_s29 + $0xf8] sm:$0xff] %v259_v31  ;;  %v263_v33 = vld [vmem:[%s996_s28 + $0x408] sm:$0xff] }
  0x26   : > { %262 = vst [vmem:[%s1001_s29 + $0x100] sm:$0xff] %v261_v32  ;;  %v265_v34 = vld [vmem:[%s996_s28 + $0x440] sm:$0xff]  ;;  %v267_v35 = vld [vmem:[%s996_s28 + $0x448] sm:$0xff]  ;;  %264 = vst [vmem:[%s1001_s29 + $0x108] sm:$0xff] %v263_v33 }
  0x27   : > { %266 = vst [vmem:[%s1001_s29 + $0x110] sm:$0xff] %v265_v34  ;;  %268 = vst [vmem:[%s1001_s29 + $0x118] sm:$0xff] %v267_v35  ;;  %v269_v36 = vld [vmem:[%s996_s28 + $0x480] sm:$0xff]  ;;  %v271_v37 = vld [vmem:[%s996_s28 + $0x488] sm:$0xff] }
  0x28   : > { %v273_v38 = vld [vmem:[%s996_s28 + $0x4c0] sm:$0xff]  ;;  %270 = vst [vmem:[%s1001_s29 + $0x120] sm:$0xff] %v269_v36  ;;  %272 = vst [vmem:[%s1001_s29 + $0x128] sm:$0xff] %v271_v37  ;;  %v275_v39 = vld [vmem:[%s996_s28 + $0x4c8] sm:$0xff] }
  0x29   : > { %274 = vst [vmem:[%s1001_s29 + $0x130] sm:$0xff] %v273_v38  ;;  %v277_v40 = vld [vmem:[%s996_s28 + $0x500] sm:$0xff]  ;;  %v279_v41 = vld [vmem:[%s996_s28 + $0x508] sm:$0xff]  ;;  %276 = vst [vmem:[%s1001_s29 + $0x138] sm:$0xff] %v275_v39 }
  0x2a   : > { %278 = vst [vmem:[%s1001_s29 + $0x140] sm:$0xff] %v277_v40  ;;  %280 = vst [vmem:[%s1001_s29 + $0x148] sm:$0xff] %v279_v41  ;;  %v281_v42 = vld [vmem:[%s996_s28 + $0x540] sm:$0xff]  ;;  %v283_v43 = vld [vmem:[%s996_s28 + $0x548] sm:$0xff] }
  0x2b   : > { %v285_v44 = vld [vmem:[%s996_s28 + $0x580] sm:$0xff]  ;;  %282 = vst [vmem:[%s1001_s29 + $0x150] sm:$0xff] %v281_v42  ;;  %284 = vst [vmem:[%s1001_s29 + $0x158] sm:$0xff] %v283_v43  ;;  %v287_v45 = vld [vmem:[%s996_s28 + $0x588] sm:$0xff] }
  0x2c   : > { %286 = vst [vmem:[%s1001_s29 + $0x160] sm:$0xff] %v285_v44  ;;  %v289_v46 = vld [vmem:[%s996_s28 + $0x5c0] sm:$0xff]  ;;  %v291_v47 = vld [vmem:[%s996_s28 + $0x5c8] sm:$0xff]  ;;  %288 = vst [vmem:[%s1001_s29 + $0x168] sm:$0xff] %v287_v45 }
  0x2d   : > { %290 = vst [vmem:[%s1001_s29 + $0x170] sm:$0xff] %v289_v46  ;;  %292 = vst [vmem:[%s1001_s29 + $0x178] sm:$0xff] %v291_v47  ;;  %v293_v48 = vld [vmem:[%s996_s28 + $0x600] sm:$0xff]  ;;  %v295_v49 = vld [vmem:[%s996_s28 + $0x608] sm:$0xff] }
  0x2e   : > { %v297_v50 = vld [vmem:[%s996_s28 + $0x640] sm:$0xff]  ;;  %294 = vst [vmem:[%s1001_s29 + $0x180] sm:$0xff] %v293_v48  ;;  %296 = vst [vmem:[%s1001_s29 + $0x188] sm:$0xff] %v295_v49  ;;  %v299_v51 = vld [vmem:[%s996_s28 + $0x648] sm:$0xff] }
  0x2f   : > { %298 = vst [vmem:[%s1001_s29 + $0x190] sm:$0xff] %v297_v50  ;;  %v301_v52 = vld [vmem:[%s996_s28 + $0x680] sm:$0xff]  ;;  %v303_v53 = vld [vmem:[%s996_s28 + $0x688] sm:$0xff]  ;;  %300 = vst [vmem:[%s1001_s29 + $0x198] sm:$0xff] %v299_v51 }
  0x30   : > { %302 = vst [vmem:[%s1001_s29 + $0x1a0] sm:$0xff] %v301_v52  ;;  %304 = vst [vmem:[%s1001_s29 + $0x1a8] sm:$0xff] %v303_v53  ;;  %v305_v54 = vld [vmem:[%s996_s28 + $0x6c0] sm:$0xff]  ;;  %v307_v55 = vld [vmem:[%s996_s28 + $0x6c8] sm:$0xff] }
  0x31   : > { %v309_v56 = vld [vmem:[%s996_s28 + $0x700] sm:$0xff]  ;;  %306 = vst [vmem:[%s1001_s29 + $0x1b0] sm:$0xff] %v305_v54  ;;  %308 = vst [vmem:[%s1001_s29 + $0x1b8] sm:$0xff] %v307_v55  ;;  %v311_v57 = vld [vmem:[%s996_s28 + $0x708] sm:$0xff] }
  0x32   : > { %310 = vst [vmem:[%s1001_s29 + $0x1c0] sm:$0xff] %v309_v56  ;;  %v313_v58 = vld [vmem:[%s996_s28 + $0x740] sm:$0xff]  ;;  %v315_v59 = vld [vmem:[%s996_s28 + $0x748] sm:$0xff]  ;;  %312 = vst [vmem:[%s1001_s29 + $0x1c8] sm:$0xff] %v311_v57 }
  0x33   : > { %314 = vst [vmem:[%s1001_s29 + $0x1d0] sm:$0xff] %v313_v58  ;;  %316 = vst [vmem:[%s1001_s29 + $0x1d8] sm:$0xff] %v315_v59  ;;  %v317_v60 = vld [vmem:[%s996_s28 + $0x780] sm:$0xff]  ;;  %v319_v61 = vld [vmem:[%s996_s28 + $0x788] sm:$0xff] }
  0x34   : > { %v321_v62 = vld [vmem:[%s996_s28 + $0x7c0] sm:$0xff]  ;;  %318 = vst [vmem:[%s1001_s29 + $0x1e0] sm:$0xff] %v317_v60  ;;  %320 = vst [vmem:[%s1001_s29 + $0x1e8] sm:$0xff] %v319_v61  ;;  %v323_v63 = vld [vmem:[%s996_s28 + $0x7c8] sm:$0xff] }
  0x35   : > { %322 = vst [vmem:[%s1001_s29 + $0x1f0] sm:$0xff] %v321_v62  ;;  %324 = vst [vmem:[%s1001_s29 + $0x1f8] sm:$0xff] %v323_v63 }
  0x36 PF: > { %p741_p8 = scmp.ge.s32.totalorder %s926_s16, 1  ;;  %p337_p9 = scmp.lt.s32.totalorder %s926_s16, 5 }
  0x38   : > { %p338_p10 = pnand %p741_p8, %p337_p9 }
  0x39   : > { %s344_s30 = sand.u32 (!%p338_p10), 1, %s910_s12   ;;  %v414_v0 = vld [vmem:[%s1238_s0 + $0x8] sm:$0xff] (!%p338_p10)  ;;  %v416_v1 = vld [vmem:[%s1238_s0 + $0x18] sm:$0xff] (!%p338_p10)  ;;  %s744_s20 = sshll.u32 (!%p338_p10), %s918_s14, 1 }
  0x3a   : > { %341 = sbr.rel (%p338_p10) target bundleno = 351 (0x15f), region = 51  ;;  %s742_s8 = sshll.u32 (!%p338_p10), %s344_s30, 9  ;;  %545 = vmatprep.mubr.f32.mxu0 (!%p338_p10), %v414_v0  ;;  %551 = vmatprep.mubr.f32.mxu1 (!%p338_p10), %v416_v1 }
  0x3b   : > { %s1139_s9 = scalar_lea.vmem (!%p338_p10), [#allocation3], %s742_s8  ;;  %p395_p11 = scmp.lt.s32.totalorder (!%p338_p10), %s744_s20, 7 }
  0x3c   : > { %v418_v2 = vld [vmem:[%s1139_s9 + $0x8] sm:$0xff] (!%p338_p10)  ;;  %v420_v3 = vld [vmem:[%s1139_s9 + $0x18] sm:$0xff] (!%p338_p10)  ;;  %v417_v4 = vld [vmem:[%s1139_s9] sm:$0xff] (!%p338_p10)  ;;  %s743_s26 = sshll.u32 (!%p338_p10), %s344_s30, 5 }
  0x3d   : > { %v752_v5 = vpack.c.bf16 (!%p338_p10), %v420_v3, %v418_v2  ;;  %v419_v6 = vld [vmem:[%s1139_s9 + $0x10] sm:$0xff] (!%p338_p10)  ;;  %v422_v7 = vld [vmem:[%s1139_s9 + $0x28] sm:$0xff] (!%p338_p10)  ;;  %v424_v8 = vld [vmem:[%s1139_s9 + $0x38] sm:$0xff] (!%p338_p10)  ;;  %s379_s27 = scalar_lea.vmem (!%p338_p10), [#allocation4], %s743_s26 }
  0x3e   : > { %v754_v9 = vpack.c.bf16 (!%p338_p10), %v419_v6, %v417_v4  ;;  %v756_v10 = vpack.c.bf16 (!%p338_p10), %v424_v8, %v422_v7  ;;  %v421_v11 = vld [vmem:[%s1139_s9 + $0x20] sm:$0xff] (!%p338_p10)  ;;  %v423_v12 = vld [vmem:[%s1139_s9 + $0x30] sm:$0xff] (!%p338_p10)  ;;  %v426_v13 = vld [vmem:[%s1139_s9 + $0x48] sm:$0xff] (!%p338_p10) }
  0x3f   : > { %753 = vmatprep.subr.bf16.mxu0 (!%p338_p10), %v752_v5  ;;  %816 = vmatprep.subr.bf16.mxu1 (!%p338_p10), %v752_v5  ;;  %v428_v14 = vld [vmem:[%s1139_s9 + $0x58] sm:$0xff] (!%p338_p10)  ;;  %v758_v15 = vpack.c.bf16 (!%p338_p10), %v423_v12, %v421_v11  ;;  %v425_v17 = vld [vmem:[%s1139_s9 + $0x40] sm:$0xff] (!%p338_p10)  ;;  %v427_v18 = vld [vmem:[%s1139_s9 + $0x50] sm:$0xff] (!%p338_p10) }
  0x40   : > { %755 = vmatpush1.bf16.msra.mxu0 (!%p338_p10), %v754_v9  ;;  %832 = vmatpush1.bf16.msra.mxu1 (!%p338_p10), %v754_v9  ;;  %v760_v16 = vpack.c.bf16 (!%p338_p10), %v428_v14, %v426_v13  ;;  %v430_v19 = vld [vmem:[%s1139_s9 + $0x68] sm:$0xff] (!%p338_p10)  ;;  %v432_v20 = vld [vmem:[%s1139_s9 + $0x78] sm:$0xff] (!%p338_p10)  ;;  %v762_v21 = vpack.c.bf16 (!%p338_p10), %v427_v18, %v425_v17  ;;  %v429_v23 = vld [vmem:[%s1139_s9 + $0x60] sm:$0xff] (!%p338_p10) }
  0x41   : > { %757 = vmatprep.subr.bf16.mxu0 %v756_v10  ;;  %817 = vmatprep.subr.bf16.mxu1 %v756_v10  ;;  %v764_v22 = vpack.c.bf16 %v432_v20, %v430_v19  ;;  %v431_v24 = vld [vmem:[%s1139_s9 + $0x70] sm:$0xff]  ;;  %v434_v25 = vld [vmem:[%s1139_s9 + $0x88] sm:$0xff]  ;;  %v436_v26 = vld [vmem:[%s1139_s9 + $0x98] sm:$0xff]  ;;  %s1250_s20 = smov (!%p395_p11, %s744_s20), 7  ;;  %s751_s12 = sshll.u32 (%p983_p6), %s918_s14, 4 }
  0x42   : > { %v766_v27 = vpack.c.bf16 %v431_v24, %v429_v23  ;;  %v768_v28 = vpack.c.bf16 %v436_v26, %v434_v25  ;;  %v433_v29 = vld [vmem:[%s1139_s9 + $0x80] sm:$0xff]  ;;  %v435_v30 = vld [vmem:[%s1139_s9 + $0x90] sm:$0xff]  ;;  %v438_v31 = vld [vmem:[%s1139_s9 + $0xa8] sm:$0xff]  ;;  %s397_s25 = scalar_lea.vmem %s1240_s2, %s1250_s20  ;;  %s605_s30 = scalar_lea.vmem (%p983_p6), %s1241_s3, %s751_s12 }
  0x43   : > { %v440_v32 = vld [vmem:[%s1139_s9 + $0xb8] sm:$0xff]  ;;  %v770_v33 = vpack.c.bf16 %v435_v30, %v433_v29  ;;  %v437_v35 = vld [vmem:[%s1139_s9 + $0xa0] sm:$0xff]  ;;  %v439_v36 = vld [vmem:[%s1139_s9 + $0xb0] sm:$0xff] }
  0x44   : > { %759 = vmatpush1.bf16.msra.mxu0 %v758_v15  ;;  %833 = vmatpush1.bf16.msra.mxu1 %v758_v15  ;;  %v772_v34 = vpack.c.bf16 %v440_v32, %v438_v31  ;;  %v442_v37 = vld [vmem:[%s1139_s9 + $0xc8] sm:$0xff]  ;;  %v444_v38 = vld [vmem:[%s1139_s9 + $0xd8] sm:$0xff]  ;;  %v774_v39 = vpack.c.bf16 %v439_v36, %v437_v35  ;;  %v441_v41 = vld [vmem:[%s1139_s9 + $0xc0] sm:$0xff]  ;;  %v575_v36 = vlaneseq }
  0x45   : > { %761 = vmatprep.subr.bf16.mxu0 %v760_v16  ;;  %818 = vmatprep.subr.bf16.mxu1 %v760_v16  ;;  %v776_v40 = vpack.c.bf16 %v444_v38, %v442_v37  ;;  %v443_v42 = vld [vmem:[%s1139_s9 + $0xd0] sm:$0xff]  ;;  %v446_v43 = vld [vmem:[%s1139_s9 + $0xe8] sm:$0xff]  ;;  %v448_v44 = vld [vmem:[%s1139_s9 + $0xf8] sm:$0xff] }
  0x46   : > { %v778_v45 = vpack.c.bf16 %v443_v42, %v441_v41  ;;  %v780_v46 = vpack.c.bf16 %v448_v44, %v446_v43  ;;  %v445_v47 = vld [vmem:[%s1139_s9 + $0xe0] sm:$0xff]  ;;  %v447_v48 = vld [vmem:[%s1139_s9 + $0xf0] sm:$0xff]  ;;  %v450_v49 = vld [vmem:[%s1139_s9 + $0x108] sm:$0xff]  ;;  %v576_v37 = vshrl.u32 %v575_v36, 7 }
  0x47   : > { %v452_v50 = vld [vmem:[%s1139_s9 + $0x118] sm:$0xff]  ;;  %v782_v51 = vpack.c.bf16 %v447_v48, %v445_v47  ;;  %v449_v53 = vld [vmem:[%s1139_s9 + $0x100] sm:$0xff]  ;;  %v451_v54 = vld [vmem:[%s1139_s9 + $0x110] sm:$0xff] }
  0x48   : > { %763 = vmatpush1.bf16.msra.mxu0 %v762_v21  ;;  %834 = vmatpush1.bf16.msra.mxu1 %v762_v21  ;;  %v784_v52 = vpack.c.bf16 %v452_v50, %v450_v49  ;;  %v454_v55 = vld [vmem:[%s1139_s9 + $0x128] sm:$0xff]  ;;  %v456_v56 = vld [vmem:[%s1139_s9 + $0x138] sm:$0xff]  ;;  %v786_v57 = vpack.c.bf16 %v451_v54, %v449_v53  ;;  %v453_v59 = vld [vmem:[%s1139_s9 + $0x120] sm:$0xff]  ;;  %v577_v38 = vsub.s32 0, %v576_v37 }
  0x49   : > { %765 = vmatprep.subr.bf16.mxu0 %v764_v22  ;;  %819 = vmatprep.subr.bf16.mxu1 %v764_v22  ;;  %v788_v58 = vpack.c.bf16 %v456_v56, %v454_v55  ;;  %v455_v60 = vld [vmem:[%s1139_s9 + $0x130] sm:$0xff]  ;;  %v458_v61 = vld [vmem:[%s1139_s9 + $0x148] sm:$0xff]  ;;  %v460_v62 = vld [vmem:[%s1139_s9 + $0x158] sm:$0xff] }
  0x4a   : > { %v790_v63 = vpack.c.bf16 %v455_v60, %v453_v59  ;;  %v792_v0 = vpack.c.bf16 %v460_v62, %v458_v61  ;;  %v457_v1 = vld [vmem:[%s1139_s9 + $0x140] sm:$0xff]  ;;  %v459_v2 = vld [vmem:[%s1139_s9 + $0x150] sm:$0xff]  ;;  %v462_v3 = vld [vmem:[%s1139_s9 + $0x168] sm:$0xff] }
  0x4b   : > { %v464_v4 = vld [vmem:[%s1139_s9 + $0x178] sm:$0xff]  ;;  %v794_v5 = vpack.c.bf16 %v459_v2, %v457_v1  ;;  %v461_v7 = vld [vmem:[%s1139_s9 + $0x160] sm:$0xff]  ;;  %v463_v8 = vld [vmem:[%s1139_s9 + $0x170] sm:$0xff] }
  0x4c   : > { %767 = vmatpush1.bf16.msra.mxu0 %v766_v27  ;;  %835 = vmatpush1.bf16.msra.mxu1 %v766_v27  ;;  %v796_v6 = vpack.c.bf16 %v464_v4, %v462_v3  ;;  %v466_v9 = vld [vmem:[%s1139_s9 + $0x188] sm:$0xff]  ;;  %v468_v10 = vld [vmem:[%s1139_s9 + $0x198] sm:$0xff]  ;;  %v798_v11 = vpack.c.bf16 %v463_v8, %v461_v7  ;;  %v465_v13 = vld [vmem:[%s1139_s9 + $0x180] sm:$0xff] }
  0x4d   : > { %769 = vmatprep.subr.bf16.mxu0 %v768_v28  ;;  %820 = vmatprep.subr.bf16.mxu1 %v768_v28  ;;  %v800_v12 = vpack.c.bf16 %v468_v10, %v466_v9  ;;  %v467_v14 = vld [vmem:[%s1139_s9 + $0x190] sm:$0xff]  ;;  %v470_v15 = vld [vmem:[%s1139_s9 + $0x1a8] sm:$0xff]  ;;  %v472_v16 = vld [vmem:[%s1139_s9 + $0x1b8] sm:$0xff] }
  0x4e   : > { %v802_v17 = vpack.c.bf16 %v467_v14, %v465_v13  ;;  %v804_v18 = vpack.c.bf16 %v472_v16, %v470_v15  ;;  %v469_v19 = vld [vmem:[%s1139_s9 + $0x1a0] sm:$0xff]  ;;  %v471_v20 = vld [vmem:[%s1139_s9 + $0x1b0] sm:$0xff]  ;;  %v474_v21 = vld [vmem:[%s1139_s9 + $0x1c8] sm:$0xff] }
  0x4f   : > { %v476_v22 = vld [vmem:[%s1139_s9 + $0x1d8] sm:$0xff]  ;;  %v806_v23 = vpack.c.bf16 %v471_v20, %v469_v19  ;;  %v473_v25 = vld [vmem:[%s1139_s9 + $0x1c0] sm:$0xff]  ;;  %v475_v26 = vld [vmem:[%s1139_s9 + $0x1d0] sm:$0xff] }
  0x50   : > { %771 = vmatpush1.bf16.msra.mxu0 %v770_v33  ;;  %836 = vmatpush1.bf16.msra.mxu1 %v770_v33  ;;  %v808_v24 = vpack.c.bf16 %v476_v22, %v474_v21  ;;  %v478_v27 = vld [vmem:[%s1139_s9 + $0x1e8] sm:$0xff]  ;;  %v480_v28 = vld [vmem:[%s1139_s9 + $0x1f8] sm:$0xff]  ;;  %v810_v29 = vpack.c.bf16 %v475_v26, %v473_v25  ;;  %v477_v31 = vld [vmem:[%s1139_s9 + $0x1e0] sm:$0xff] }
  0x51   : > { %773 = vmatprep.subr.bf16.mxu0 %v772_v34  ;;  %821 = vmatprep.subr.bf16.mxu1 %v772_v34  ;;  %v812_v30 = vpack.c.bf16 %v480_v28, %v478_v27  ;;  %v479_v32 = vld [vmem:[%s1139_s9 + $0x1f0] sm:$0xff]  ;;  %v413_v34 = vld [vmem:[%s1238_s0] sm:$0xff] }
  0x52   : > { %v814_v33 = vpack.c.bf16 %v479_v32, %v477_v31  ;;  %v415_v35 = vld [vmem:[%s1238_s0 + $0x10] sm:$0xff] }
  0x54   : > { %775 = vmatpush1.bf16.msra.mxu0 %v774_v39  ;;  %837 = vmatpush1.bf16.msra.mxu1 %v774_v39  ;;  %v573_v39 = vld [vmem:[%s397_s25] sm:$0x3] }
  0x55   : > { %777 = vmatprep.subr.bf16.mxu0 %v776_v40  ;;  %822 = vmatprep.subr.bf16.mxu1 %v776_v40  ;;  %v581_v40 = vsub.s32 1, %v576_v37  ;;  %v578_v41 = vrot.slane %v573_v39, %v577_v38 }
  0x57   : > { %v582_v42 = vrot.slane %v573_v39, %v581_v40 }
  0x58   : > { %779 = vmatpush1.bf16.msra.mxu0 %v778_v45  ;;  %838 = vmatpush1.bf16.msra.mxu1 %v778_v45 }
  0x59   : > { %781 = vmatprep.subr.bf16.mxu0 %v780_v46  ;;  %823 = vmatprep.subr.bf16.mxu1 %v780_v46 }
  0x5c   : > { %783 = vmatpush1.bf16.msra.mxu0 %v782_v51  ;;  %839 = vmatpush1.bf16.msra.mxu1 %v782_v51 }
  0x5d   : > { %785 = vmatprep.subr.bf16.mxu0 %v784_v52  ;;  %824 = vmatprep.subr.bf16.mxu1 %v784_v52 }
  0x60   : > { %787 = vmatpush1.bf16.msra.mxu0 %v786_v57  ;;  %840 = vmatpush1.bf16.msra.mxu1 %v786_v57 }
  0x61   : > { %789 = vmatprep.subr.bf16.mxu0 %v788_v58  ;;  %825 = vmatprep.subr.bf16.mxu1 %v788_v58 }
  0x64   : > { %791 = vmatpush1.bf16.msra.mxu0 %v790_v63  ;;  %841 = vmatpush1.bf16.msra.mxu1 %v790_v63 }
  0x65   : > { %793 = vmatprep.subr.bf16.mxu0 %v792_v0  ;;  %826 = vmatprep.subr.bf16.mxu1 %v792_v0 }
  0x68   : > { %795 = vmatpush1.bf16.msra.mxu0 %v794_v5  ;;  %842 = vmatpush1.bf16.msra.mxu1 %v794_v5 }
  0x69   : > { %797 = vmatprep.subr.bf16.mxu0 %v796_v6  ;;  %827 = vmatprep.subr.bf16.mxu1 %v796_v6 }
  0x6c   : > { %799 = vmatpush1.bf16.msra.mxu0 %v798_v11  ;;  %843 = vmatpush1.bf16.msra.mxu1 %v798_v11 }
  0x6d   : > { %801 = vmatprep.subr.bf16.mxu0 %v800_v12  ;;  %828 = vmatprep.subr.bf16.mxu1 %v800_v12 }
  0x70   : > { %803 = vmatpush1.bf16.msra.mxu0 %v802_v17  ;;  %844 = vmatpush1.bf16.msra.mxu1 %v802_v17 }
  0x71   : > { %805 = vmatprep.subr.bf16.mxu0 %v804_v18  ;;  %829 = vmatprep.subr.bf16.mxu1 %v804_v18 }
  0x74   : > { %807 = vmatpush1.bf16.msra.mxu0 %v806_v23  ;;  %845 = vmatpush1.bf16.msra.mxu1 %v806_v23 }
  0x75   : > { %809 = vmatprep.subr.bf16.mxu0 %v808_v24  ;;  %830 = vmatprep.subr.bf16.mxu1 %v808_v24 }
  0x78   : > { %811 = vmatpush1.bf16.msra.mxu0 %v810_v29  ;;  %846 = vmatpush1.bf16.msra.mxu1 %v810_v29 }
  0x79   : > { %813 = vmatprep.subr.bf16.mxu0 %v812_v30  ;;  %831 = vmatprep.subr.bf16.mxu1 %v812_v30 }
  0x7c   : > { %815 = vmatpush1.bf16.msra.mxu0 %v814_v33  ;;  %847 = vmatpush1.bf16.msra.mxu1 %v814_v33 }
  0x7f   : > { %546 = vmatmul.mubr.f32.vlgmr.msra.gmra.mrb[0].mxu0 %v413_v34  ;;  %552 = vmatmul.mubr.f32.vlgmr.msra.gmra.mrb[0].mxu1 %v415_v35 }
 0x150   : > { %599 = sbr.rel (!%p983_p6) target bundleno = 351 (0x15f), region = 67 }
 0x152   : > { %v547_v43 = vpop.f32.mrb[0].mxu0  ;;  %v553_v44 = vpop.f32.mrb[0].mxu1 }
 0x153   : > { %v585_v45 = vadd.f32 %v578_v41, %v547_v43  ;;  %v587_v46 = vadd.f32 %v578_v41, %v553_v44  ;;  %v549_v47 = vpop.f32.mrb[1].mxu0  ;;  %v555_v48 = vpop.f32.mrb[1].mxu1 }
 0x154   : > { %v586_v49 = vadd.f32 %v582_v42, %v549_v47  ;;  %v588_v50 = vadd.f32 %v582_v42, %v555_v48 }
 0x155   : > { %589 = vst [vmem:[%s379_s27] sm:$0xff] %v585_v45  ;;  %591 = vst [vmem:[%s379_s27 + $0x10] sm:$0xff] %v587_v46 }
 0x156   : > { %590 = vst [vmem:[%s379_s27 + $0x8] sm:$0xff] %v586_v49  ;;  %592 = vst [vmem:[%s379_s27 + $0x18] sm:$0xff] %v588_v50 }
 0x15c   : > { %v618_v51 = vld [vmem:[%s379_s27] sm:$0xff]  ;;  %v622_v53 = vld [vmem:[%s379_s27 + $0x10] sm:$0xff] }
 0x15d   : > { %v620_v52 = vld [vmem:[%s379_s27 + $0x8] sm:$0xff]  ;;  %v624_v54 = vld [vmem:[%s379_s27 + $0x18] sm:$0xff]  ;;  %619 = vst [vmem:[%s605_s30] sm:$0xff] %v618_v51  ;;  %623 = vst [vmem:[%s605_s30 + $0x40] sm:$0xff] %v622_v53 }
 0x15e   : > { %621 = vst [vmem:[%s605_s30 + $0x8] sm:$0xff] %v620_v52  ;;  %625 = vst [vmem:[%s605_s30 + $0x48] sm:$0xff] %v624_v54 }
 0x15f PF: > { %s13_s16 = sadd.s32 1, %s926_s16   ;;  %s1243_s12 = smov %s914_s13 }
 0x160   : > { %p10_p12 = scmp.ge.s32.totalorder %s13_s16, 6   ;;  %s1244_s13 = smov %s988_s22 }
 0x161   : > { %s1245_s14 = smov %s922_s15  ;;  %s1246_s15 = smov %s1248_s17 }
 0x162   :  { %12 = sbr.rel (!%p10_p12) target bundleno = 3 (0x3), region = 127 }

</bundles_post_ra>
